<compile_context>
chip_gen: v5e
topology: v5e:2x2
jax: 0.10.0
libtpu: 0.0.40
codegen_flags: <defaults>
</compile_context>

<pallas_src>
import jax
import jax.numpy as jnp
from jax import lax
from jax.experimental import pallas as pl
from jax.experimental.pallas import tpu as pltpu


def _lstm_lin_kernel(x_ref, wih_ref, whh_ref, b_ref, wl_ref, bl_ref,
                     out_ref, hT_ref, cT_ref):
    """Sequential LSTM over time + Linear + ReLU, all in one kernel body."""
    T = x_ref.shape[0]
    H = whh_ref.shape[0]

    # --- Hoisted input projection (one MXU matmul for all timesteps, bias folded in).
    xw = (jnp.dot(x_ref[...], wih_ref[...], preferred_element_type=jnp.float32)
          + b_ref[...])                                    # (T, 4H)

    # --- Hoisted loop-invariant weight load.
    whh = whh_ref[...]                                     # (H, 4H)

    h = jnp.zeros((1, H), jnp.float32)
    c = jnp.zeros((1, H), jnp.float32)
    hs_rows = []

    # --- Fully unrolled recurrence (T is a small static constant).
    # NOTE: matmul_push_rhs/matmul_acc_lhs weight-residency deliberately not used; at
    # H=16 the plain jnp.dot lowering is already latency-minimal and far less fragile.
    for t in range(T):
        gates = xw[t:t + 1, :] + jnp.dot(h, whh,
                                         preferred_element_type=jnp.float32)  # (1, 4H)
        # One sigmoid + one tanh over the full gate vector, then slice.
        sig = jax.nn.sigmoid(gates)
        th = jnp.tanh(gates)
        i_g = sig[:, 0 * H:1 * H]
        f_g = sig[:, 1 * H:2 * H]
        g_g = th[:, 2 * H:3 * H]
        o_g = sig[:, 3 * H:4 * H]
        c = f_g * c + i_g * g_g
        h = o_g * jnp.tanh(c)
        hs_rows.append(h)                                  # register-resident rows

    hT_ref[...] = h
    cT_ref[...] = c

    # F.relu(lin1(output.view(T, -1))) — feed the Linear straight from registers.
    hs = jnp.concatenate(hs_rows, axis=0)                  # (T, H)
    y = jnp.dot(hs, wl_ref[...], preferred_element_type=jnp.float32) + bl_ref[...]
    out_ref[...] = jnp.maximum(y, 0.0)


def prepare_params(w_ih, w_hh, b_ih, b_hh, w_lin, b_lin):
    """One-time parameter prep: transpose to right-multiply form, fuse LSTM biases."""
    four_h = w_ih.shape[0]
    n_cls = w_lin.shape[0]
    wih_t = jnp.transpose(w_ih).astype(jnp.float32)            # (D_in, 4H)
    whh_t = jnp.transpose(w_hh).astype(jnp.float32)            # (H, 4H)
    b = (b_ih + b_hh).reshape(1, four_h).astype(jnp.float32)   # (1, 4H)
    wl_t = jnp.transpose(w_lin).astype(jnp.float32)            # (H, n_cls)
    bl = b_lin.reshape(1, n_cls).astype(jnp.float32)           # (1, n_cls)
    return wih_t, whh_t, b, wl_t, bl


@jax.jit
def rnn_forward(x, wih_t, whh_t, b, wl_t, bl):
    """Mirrors RNN.forward: returns (relu(lin1(lstm_out)), (h_n, c_n))."""
    T = x.shape[0]
    H = whh_t.shape[0]
    n_cls = wl_t.shape[1]

    vmem_spec = pl.BlockSpec(memory_space=pltpu.MemorySpace.VMEM)

    out, hT, cT = pl.pallas_call(
        _lstm_lin_kernel,
        out_shape=(
            jax.ShapeDtypeStruct((T, n_cls), jnp.float32),
            jax.ShapeDtypeStruct((1, H), jnp.float32),
            jax.ShapeDtypeStruct((1, H), jnp.float32),
        ),
        in_specs=[vmem_spec] * 6,
        out_specs=(vmem_spec, vmem_spec, vmem_spec),
    )(x.astype(jnp.float32), wih_t, whh_t, b, wl_t, bl)

    # PyTorch nn.LSTM final_state: (h_n, c_n), each (num_layers=1, batch=1, H).
    return out, (hT.reshape(1, 1, H), cT.reshape(1, 1, H))


def _reference(x, w_ih, w_hh, b_ih, b_hh, w_lin, b_lin):
    """Pure-JAX reference implementing PyTorch LSTM + Linear + ReLU semantics."""
    T, _ = x.shape
    H = w_hh.shape[1]
    h = jnp.zeros((1, H), jnp.float32)
    c = jnp.zeros((1, H), jnp.float32)
    hs = []
    for t in range(T):
        g = x[t:t + 1] @ w_ih.T + b_ih + h @ w_hh.T + b_hh
        i = jax.nn.sigmoid(g[:, 0 * H:1 * H])
        f = jax.nn.sigmoid(g[:, 1 * H:2 * H])
        gg = jnp.tanh(g[:, 2 * H:3 * H])
        o = jax.nn.sigmoid(g[:, 3 * H:4 * H])
        c = f * c + i * gg
        h = o * jnp.tanh(c)
        hs.append(h)
    hs = jnp.concatenate(hs, axis=0)
    y = jnp.maximum(hs @ w_lin.T + b_lin, 0.0)
    return y, (h.reshape(1, 1, H), c.reshape(1, 1, H))


if __name__ == "__main__":
    # Small shapes consistent with the module (input_size == num_classes).
    seq_len = 8
    input_size = 32
    hidden_dim = 16
    num_classes = input_size

    key = jax.random.PRNGKey(0)
    ks = jax.random.split(key, 8)
    # PyTorch-style uniform(-1/sqrt(H), 1/sqrt(H)) init, deterministic.
    bound = 1.0 / (hidden_dim ** 0.5)
    u = lambda k, shape: jax.random.uniform(k, shape, jnp.float32, -bound, bound)

    x = jax.random.normal(ks[0], (seq_len, input_size), jnp.float32)
    w_ih = u(ks[1], (4 * hidden_dim, input_size))
    w_hh = u(ks[2], (4 * hidden_dim, hidden_dim))
    b_ih = u(ks[3], (4 * hidden_dim,))
    b_hh = u(ks[4], (4 * hidden_dim,))
    w_lin = u(ks[5], (num_classes, hidden_dim))
    b_lin = u(ks[6], (num_classes,))

    # One-time parameter prep (kept out of the per-call hot path).
    params = prepare_params(w_ih, w_hh, b_ih, b_hh, w_lin, b_lin)
    params = jax.block_until_ready(params)

    out, (h_n, c_n) = rnn_forward(x, *params)
    jax.block_until_ready((out, h_n, c_n))

    ref_out, (ref_h, ref_c) = _reference(x, w_ih, w_hh, b_ih, b_hh, w_lin, b_lin)
    assert out.shape == (seq_len, num_classes)
    assert h_n.shape == (1, 1, hidden_dim) and c_n.shape == (1, 1, hidden_dim)
    assert jnp.allclose(out, ref_out, atol=1e-4, rtol=1e-4)
    assert jnp.allclose(h_n, ref_h, atol=1e-4, rtol=1e-4)
    assert jnp.allclose(c_n, ref_c, atol=1e-4, rtol=1e-4)

    print("KERNEL_OK")
</pallas_src>

<mosaic_0001>
module attributes {stable_mosaic.version = 11 : i64} {
  func.func @_lstm_lin_kernel(%arg0: memref<8x32xf32, #tpu.memory_space<vmem>>, %arg1: memref<32x64xf32, #tpu.memory_space<vmem>>, %arg2: memref<16x64xf32, #tpu.memory_space<vmem>>, %arg3: memref<1x64xf32, #tpu.memory_space<vmem>>, %arg4: memref<16x32xf32, #tpu.memory_space<vmem>>, %arg5: memref<1x32xf32, #tpu.memory_space<vmem>>, %arg6: memref<8x32xf32, #tpu.memory_space<vmem>>, %arg7: memref<1x16xf32, #tpu.memory_space<vmem>>, %arg8: memref<1x16xf32, #tpu.memory_space<vmem>>) attributes {dimension_semantics = [], scalar_prefetch = 0 : i64, scratch_operands = 0 : i64, tpu.core_type = #tpu.core_type<tc>} {
    %c0 = arith.constant 0 : index
    %c0_0 = arith.constant 0 : index
    %0 = vector.load %arg0[%c0, %c0_0] : memref<8x32xf32, #tpu.memory_space<vmem>>, vector<8x32xf32>
    %c0_1 = arith.constant 0 : index
    %c0_2 = arith.constant 0 : index
    %1 = vector.load %arg1[%c0_1, %c0_2] : memref<32x64xf32, #tpu.memory_space<vmem>>, vector<32x64xf32>
    %cst = arith.constant dense<0.000000e+00> : vector<8x64xf32>
    %2 = tpu.matmul %0, %1, %cst {dimension_numbers = #tpu.dot_dimension_numbers<[1], [0], [0], [1], [0, 0, 1, 1], [], []>} : vector<8x32xf32>, vector<32x64xf32>, vector<8x64xf32> -> vector<8x64xf32>
    %c0_3 = arith.constant 0 : index
    %c0_4 = arith.constant 0 : index
    %3 = vector.load %arg3[%c0_3, %c0_4] : memref<1x64xf32, #tpu.memory_space<vmem>>, vector<1x64xf32>
    %4 = vector.broadcast %3 : vector<1x64xf32> to vector<8x64xf32>
    %5 = arith.addf %2, %4 : vector<8x64xf32>
    %c0_5 = arith.constant 0 : index
    %c0_6 = arith.constant 0 : index
    %6 = vector.load %arg2[%c0_5, %c0_6] : memref<16x64xf32, #tpu.memory_space<vmem>>, vector<16x64xf32>
    %cst_7 = arith.constant 0.000000e+00 : f32
    %7 = vector.broadcast %cst_7 : f32 to vector<1x16xf32>
    %cst_8 = arith.constant 0.000000e+00 : f32
    %8 = vector.broadcast %cst_8 : f32 to vector<1x16xf32>
    %9 = vector.extract_strided_slice %5 {offsets = [0, 0], sizes = [1, 64], strides = [1, 1]} : vector<8x64xf32> to vector<1x64xf32>
    %cst_9 = arith.constant dense<0.000000e+00> : vector<1x64xf32>
    %10 = tpu.matmul %7, %6, %cst_9 {dimension_numbers = #tpu.dot_dimension_numbers<[1], [0], [0], [1], [0, 0, 1, 1], [], []>} : vector<1x16xf32>, vector<16x64xf32>, vector<1x64xf32> -> vector<1x64xf32>
    %11 = arith.addf %9, %10 : vector<1x64xf32>
    %12 = arith.negf %11 : vector<1x64xf32>
    %13 = math.exp %12 : vector<1x64xf32>
    %cst_10 = arith.constant 1.000000e+00 : f32
    %14 = vector.broadcast %cst_10 : f32 to vector<1x64xf32>
    %15 = arith.addf %14, %13 : vector<1x64xf32>
    %16 = arith.divf %14, %15 : vector<1x64xf32>
    %17 = math.tanh %11 : vector<1x64xf32>
    %18 = vector.extract_strided_slice %16 {offsets = [0, 0], sizes = [1, 16], strides = [1, 1]} : vector<1x64xf32> to vector<1x16xf32>
    %19 = vector.extract_strided_slice %16 {offsets = [0, 16], sizes = [1, 16], strides = [1, 1]} : vector<1x64xf32> to vector<1x16xf32>
    %20 = vector.extract_strided_slice %17 {offsets = [0, 32], sizes = [1, 16], strides = [1, 1]} : vector<1x64xf32> to vector<1x16xf32>
    %21 = vector.extract_strided_slice %16 {offsets = [0, 48], sizes = [1, 16], strides = [1, 1]} : vector<1x64xf32> to vector<1x16xf32>
    %22 = arith.mulf %19, %8 : vector<1x16xf32>
    %23 = arith.mulf %18, %20 : vector<1x16xf32>
    %24 = arith.addf %22, %23 : vector<1x16xf32>
    %25 = math.tanh %24 : vector<1x16xf32>
    %26 = arith.mulf %21, %25 : vector<1x16xf32>
    %27 = vector.extract_strided_slice %5 {offsets = [1, 0], sizes = [1, 64], strides = [1, 1]} : vector<8x64xf32> to vector<1x64xf32>
    %cst_11 = arith.constant dense<0.000000e+00> : vector<1x64xf32>
    %28 = tpu.matmul %26, %6, %cst_11 {dimension_numbers = #tpu.dot_dimension_numbers<[1], [0], [0], [1], [0, 0, 1, 1], [], []>} : vector<1x16xf32>, vector<16x64xf32>, vector<1x64xf32> -> vector<1x64xf32>
    %29 = arith.addf %27, %28 : vector<1x64xf32>
    %30 = arith.negf %29 : vector<1x64xf32>
    %31 = math.exp %30 : vector<1x64xf32>
    %cst_12 = arith.constant 1.000000e+00 : f32
    %32 = vector.broadcast %cst_12 : f32 to vector<1x64xf32>
    %33 = arith.addf %32, %31 : vector<1x64xf32>
    %34 = arith.divf %32, %33 : vector<1x64xf32>
    %35 = math.tanh %29 : vector<1x64xf32>
    %36 = vector.extract_strided_slice %34 {offsets = [0, 0], sizes = [1, 16], strides = [1, 1]} : vector<1x64xf32> to vector<1x16xf32>
    %37 = vector.extract_strided_slice %34 {offsets = [0, 16], sizes = [1, 16], strides = [1, 1]} : vector<1x64xf32> to vector<1x16xf32>
    %38 = vector.extract_strided_slice %35 {offsets = [0, 32], sizes = [1, 16], strides = [1, 1]} : vector<1x64xf32> to vector<1x16xf32>
    %39 = vector.extract_strided_slice %34 {offsets = [0, 48], sizes = [1, 16], strides = [1, 1]} : vector<1x64xf32> to vector<1x16xf32>
    %40 = arith.mulf %37, %24 : vector<1x16xf32>
    %41 = arith.mulf %36, %38 : vector<1x16xf32>
    %42 = arith.addf %40, %41 : vector<1x16xf32>
    %43 = math.tanh %42 : vector<1x16xf32>
    %44 = arith.mulf %39, %43 : vector<1x16xf32>
    %45 = vector.extract_strided_slice %5 {offsets = [2, 0], sizes = [1, 64], strides = [1, 1]} : vector<8x64xf32> to vector<1x64xf32>
    %cst_13 = arith.constant dense<0.000000e+00> : vector<1x64xf32>
    %46 = tpu.matmul %44, %6, %cst_13 {dimension_numbers = #tpu.dot_dimension_numbers<[1], [0], [0], [1], [0, 0, 1, 1], [], []>} : vector<1x16xf32>, vector<16x64xf32>, vector<1x64xf32> -> vector<1x64xf32>
    %47 = arith.addf %45, %46 : vector<1x64xf32>
    %48 = arith.negf %47 : vector<1x64xf32>
    %49 = math.exp %48 : vector<1x64xf32>
    %cst_14 = arith.constant 1.000000e+00 : f32
    %50 = vector.broadcast %cst_14 : f32 to vector<1x64xf32>
    %51 = arith.addf %50, %49 : vector<1x64xf32>
    %52 = arith.divf %50, %51 : vector<1x64xf32>
    %53 = math.tanh %47 : vector<1x64xf32>
    %54 = vector.extract_strided_slice %52 {offsets = [0, 0], sizes = [1, 16], strides = [1, 1]} : vector<1x64xf32> to vector<1x16xf32>
    %55 = vector.extract_strided_slice %52 {offsets = [0, 16], sizes = [1, 16], strides = [1, 1]} : vector<1x64xf32> to vector<1x16xf32>
    %56 = vector.extract_strided_slice %53 {offsets = [0, 32], sizes = [1, 16], strides = [1, 1]} : vector<1x64xf32> to vector<1x16xf32>
    %57 = vector.extract_strided_slice %52 {offsets = [0, 48], sizes = [1, 16], strides = [1, 1]} : vector<1x64xf32> to vector<1x16xf32>
    %58 = arith.mulf %55, %42 : vector<1x16xf32>
    %59 = arith.mulf %54, %56 : vector<1x16xf32>
    %60 = arith.addf %58, %59 : vector<1x16xf32>
    %61 = math.tanh %60 : vector<1x16xf32>
    %62 = arith.mulf %57, %61 : vector<1x16xf32>
    %63 = vector.extract_strided_slice %5 {offsets = [3, 0], sizes = [1, 64], strides = [1, 1]} : vector<8x64xf32> to vector<1x64xf32>
    %cst_15 = arith.constant dense<0.000000e+00> : vector<1x64xf32>
    %64 = tpu.matmul %62, %6, %cst_15 {dimension_numbers = #tpu.dot_dimension_numbers<[1], [0], [0], [1], [0, 0, 1, 1], [], []>} : vector<1x16xf32>, vector<16x64xf32>, vector<1x64xf32> -> vector<1x64xf32>
    %65 = arith.addf %63, %64 : vector<1x64xf32>
    %66 = arith.negf %65 : vector<1x64xf32>
    %67 = math.exp %66 : vector<1x64xf32>
    %cst_16 = arith.constant 1.000000e+00 : f32
    %68 = vector.broadcast %cst_16 : f32 to vector<1x64xf32>
    %69 = arith.addf %68, %67 : vector<1x64xf32>
    %70 = arith.divf %68, %69 : vector<1x64xf32>
    %71 = math.tanh %65 : vector<1x64xf32>
    %72 = vector.extract_strided_slice %70 {offsets = [0, 0], sizes = [1, 16], strides = [1, 1]} : vector<1x64xf32> to vector<1x16xf32>
    %73 = vector.extract_strided_slice %70 {offsets = [0, 16], sizes = [1, 16], strides = [1, 1]} : vector<1x64xf32> to vector<1x16xf32>
    %74 = vector.extract_strided_slice %71 {offsets = [0, 32], sizes = [1, 16], strides = [1, 1]} : vector<1x64xf32> to vector<1x16xf32>
    %75 = vector.extract_strided_slice %70 {offsets = [0, 48], sizes = [1, 16], strides = [1, 1]} : vector<1x64xf32> to vector<1x16xf32>
    %76 = arith.mulf %73, %60 : vector<1x16xf32>
    %77 = arith.mulf %72, %74 : vector<1x16xf32>
    %78 = arith.addf %76, %77 : vector<1x16xf32>
    %79 = math.tanh %78 : vector<1x16xf32>
    %80 = arith.mulf %75, %79 : vector<1x16xf32>
    %81 = vector.extract_strided_slice %5 {offsets = [4, 0], sizes = [1, 64], strides = [1, 1]} : vector<8x64xf32> to vector<1x64xf32>
    %cst_17 = arith.constant dense<0.000000e+00> : vector<1x64xf32>
    %82 = tpu.matmul %80, %6, %cst_17 {dimension_numbers = #tpu.dot_dimension_numbers<[1], [0], [0], [1], [0, 0, 1, 1], [], []>} : vector<1x16xf32>, vector<16x64xf32>, vector<1x64xf32> -> vector<1x64xf32>
    %83 = arith.addf %81, %82 : vector<1x64xf32>
    %84 = arith.negf %83 : vector<1x64xf32>
    %85 = math.exp %84 : vector<1x64xf32>
    %cst_18 = arith.constant 1.000000e+00 : f32
    %86 = vector.broadcast %cst_18 : f32 to vector<1x64xf32>
    %87 = arith.addf %86, %85 : vector<1x64xf32>
    %88 = arith.divf %86, %87 : vector<1x64xf32>
    %89 = math.tanh %83 : vector<1x64xf32>
    %90 = vector.extract_strided_slice %88 {offsets = [0, 0], sizes = [1, 16], strides = [1, 1]} : vector<1x64xf32> to vector<1x16xf32>
    %91 = vector.extract_strided_slice %88 {offsets = [0, 16], sizes = [1, 16], strides = [1, 1]} : vector<1x64xf32> to vector<1x16xf32>
    %92 = vector.extract_strided_slice %89 {offsets = [0, 32], sizes = [1, 16], strides = [1, 1]} : vector<1x64xf32> to vector<1x16xf32>
    %93 = vector.extract_strided_slice %88 {offsets = [0, 48], sizes = [1, 16], strides = [1, 1]} : vector<1x64xf32> to vector<1x16xf32>
    %94 = arith.mulf %91, %78 : vector<1x16xf32>
    %95 = arith.mulf %90, %92 : vector<1x16xf32>
    %96 = arith.addf %94, %95 : vector<1x16xf32>
    %97 = math.tanh %96 : vector<1x16xf32>
    %98 = arith.mulf %93, %97 : vector<1x16xf32>
    %99 = vector.extract_strided_slice %5 {offsets = [5, 0], sizes = [1, 64], strides = [1, 1]} : vector<8x64xf32> to vector<1x64xf32>
    %cst_19 = arith.constant dense<0.000000e+00> : vector<1x64xf32>
    %100 = tpu.matmul %98, %6, %cst_19 {dimension_numbers = #tpu.dot_dimension_numbers<[1], [0], [0], [1], [0, 0, 1, 1], [], []>} : vector<1x16xf32>, vector<16x64xf32>, vector<1x64xf32> -> vector<1x64xf32>
    %101 = arith.addf %99, %100 : vector<1x64xf32>
    %102 = arith.negf %101 : vector<1x64xf32>
    %103 = math.exp %102 : vector<1x64xf32>
    %cst_20 = arith.constant 1.000000e+00 : f32
    %104 = vector.broadcast %cst_20 : f32 to vector<1x64xf32>
    %105 = arith.addf %104, %103 : vector<1x64xf32>
    %106 = arith.divf %104, %105 : vector<1x64xf32>
    %107 = math.tanh %101 : vector<1x64xf32>
    %108 = vector.extract_strided_slice %106 {offsets = [0, 0], sizes = [1, 16], strides = [1, 1]} : vector<1x64xf32> to vector<1x16xf32>
    %109 = vector.extract_strided_slice %106 {offsets = [0, 16], sizes = [1, 16], strides = [1, 1]} : vector<1x64xf32> to vector<1x16xf32>
    %110 = vector.extract_strided_slice %107 {offsets = [0, 32], sizes = [1, 16], strides = [1, 1]} : vector<1x64xf32> to vector<1x16xf32>
    %111 = vector.extract_strided_slice %106 {offsets = [0, 48], sizes = [1, 16], strides = [1, 1]} : vector<1x64xf32> to vector<1x16xf32>
    %112 = arith.mulf %109, %96 : vector<1x16xf32>
    %113 = arith.mulf %108, %110 : vector<1x16xf32>
    %114 = arith.addf %112, %113 : vector<1x16xf32>
    %115 = math.tanh %114 : vector<1x16xf32>
    %116 = arith.mulf %111, %115 : vector<1x16xf32>
    %117 = vector.extract_strided_slice %5 {offsets = [6, 0], sizes = [1, 64], strides = [1, 1]} : vector<8x64xf32> to vector<1x64xf32>
    %cst_21 = arith.constant dense<0.000000e+00> : vector<1x64xf32>
    %118 = tpu.matmul %116, %6, %cst_21 {dimension_numbers = #tpu.dot_dimension_numbers<[1], [0], [0], [1], [0, 0, 1, 1], [], []>} : vector<1x16xf32>, vector<16x64xf32>, vector<1x64xf32> -> vector<1x64xf32>
    %119 = arith.addf %117, %118 : vector<1x64xf32>
    %120 = arith.negf %119 : vector<1x64xf32>
    %121 = math.exp %120 : vector<1x64xf32>
    %cst_22 = arith.constant 1.000000e+00 : f32
    %122 = vector.broadcast %cst_22 : f32 to vector<1x64xf32>
    %123 = arith.addf %122, %121 : vector<1x64xf32>
    %124 = arith.divf %122, %123 : vector<1x64xf32>
    %125 = math.tanh %119 : vector<1x64xf32>
    %126 = vector.extract_strided_slice %124 {offsets = [0, 0], sizes = [1, 16], strides = [1, 1]} : vector<1x64xf32> to vector<1x16xf32>
    %127 = vector.extract_strided_slice %124 {offsets = [0, 16], sizes = [1, 16], strides = [1, 1]} : vector<1x64xf32> to vector<1x16xf32>
    %128 = vector.extract_strided_slice %125 {offsets = [0, 32], sizes = [1, 16], strides = [1, 1]} : vector<1x64xf32> to vector<1x16xf32>
    %129 = vector.extract_strided_slice %124 {offsets = [0, 48], sizes = [1, 16], strides = [1, 1]} : vector<1x64xf32> to vector<1x16xf32>
    %130 = arith.mulf %127, %114 : vector<1x16xf32>
    %131 = arith.mulf %126, %128 : vector<1x16xf32>
    %132 = arith.addf %130, %131 : vector<1x16xf32>
    %133 = math.tanh %132 : vector<1x16xf32>
    %134 = arith.mulf %129, %133 : vector<1x16xf32>
    %135 = vector.extract_strided_slice %5 {offsets = [7, 0], sizes = [1, 64], strides = [1, 1]} : vector<8x64xf32> to vector<1x64xf32>
    %cst_23 = arith.constant dense<0.000000e+00> : vector<1x64xf32>
    %136 = tpu.matmul %134, %6, %cst_23 {dimension_numbers = #tpu.dot_dimension_numbers<[1], [0], [0], [1], [0, 0, 1, 1], [], []>} : vector<1x16xf32>, vector<16x64xf32>, vector<1x64xf32> -> vector<1x64xf32>
    %137 = arith.addf %135, %136 : vector<1x64xf32>
    %138 = arith.negf %137 : vector<1x64xf32>
    %139 = math.exp %138 : vector<1x64xf32>
    %cst_24 = arith.constant 1.000000e+00 : f32
    %140 = vector.broadcast %cst_24 : f32 to vector<1x64xf32>
    %141 = arith.addf %140, %139 : vector<1x64xf32>
    %142 = arith.divf %140, %141 : vector<1x64xf32>
    %143 = math.tanh %137 : vector<1x64xf32>
    %144 = vector.extract_strided_slice %142 {offsets = [0, 0], sizes = [1, 16], strides = [1, 1]} : vector<1x64xf32> to vector<1x16xf32>
    %145 = vector.extract_strided_slice %142 {offsets = [0, 16], sizes = [1, 16], strides = [1, 1]} : vector<1x64xf32> to vector<1x16xf32>
    %146 = vector.extract_strided_slice %143 {offsets = [0, 32], sizes = [1, 16], strides = [1, 1]} : vector<1x64xf32> to vector<1x16xf32>
    %147 = vector.extract_strided_slice %142 {offsets = [0, 48], sizes = [1, 16], strides = [1, 1]} : vector<1x64xf32> to vector<1x16xf32>
    %148 = arith.mulf %145, %132 : vector<1x16xf32>
    %149 = arith.mulf %144, %146 : vector<1x16xf32>
    %150 = arith.addf %148, %149 : vector<1x16xf32>
    %151 = math.tanh %150 : vector<1x16xf32>
    %152 = arith.mulf %147, %151 : vector<1x16xf32>
    %c0_25 = arith.constant 0 : index
    %c0_26 = arith.constant 0 : index
    %153 = vector.load %arg7[%c0_25, %c0_26] : memref<1x16xf32, #tpu.memory_space<vmem>>, vector<1x16xf32>
    tpu.vector_store %arg7[%c0_25, %c0_26], %152 {strides = array<i32>} : memref<1x16xf32, #tpu.memory_space<vmem>>, vector<1x16xf32>,
    %c0_27 = arith.constant 0 : index
    %c0_28 = arith.constant 0 : index
    %154 = vector.load %arg8[%c0_27, %c0_28] : memref<1x16xf32, #tpu.memory_space<vmem>>, vector<1x16xf32>
    tpu.vector_store %arg8[%c0_27, %c0_28], %150 {strides = array<i32>} : memref<1x16xf32, #tpu.memory_space<vmem>>, vector<1x16xf32>,
    %155 = tpu.concatenate %26, %44, %62, %80, %98, %116, %134, %152 in 0 : vector<1x16xf32>, vector<1x16xf32>, vector<1x16xf32>, vector<1x16xf32>, vector<1x16xf32>, vector<1x16xf32>, vector<1x16xf32>, vector<1x16xf32> -> vector<8x16xf32>
    %c0_29 = arith.constant 0 : index
    %c0_30 = arith.constant 0 : index
    %156 = vector.load %arg4[%c0_29, %c0_30] : memref<16x32xf32, #tpu.memory_space<vmem>>, vector<16x32xf32>
    %cst_31 = arith.constant dense<0.000000e+00> : vector<8x32xf32>
    %157 = tpu.matmul %155, %156, %cst_31 {dimension_numbers = #tpu.dot_dimension_numbers<[1], [0], [0], [1], [0, 0, 1, 1], [], []>} : vector<8x16xf32>, vector<16x32xf32>, vector<8x32xf32> -> vector<8x32xf32>
    %c0_32 = arith.constant 0 : index
    %c0_33 = arith.constant 0 : index
    %158 = vector.load %arg5[%c0_32, %c0_33] : memref<1x32xf32, #tpu.memory_space<vmem>>, vector<1x32xf32>
    %159 = vector.broadcast %158 : vector<1x32xf32> to vector<8x32xf32>
    %160 = arith.addf %157, %159 : vector<8x32xf32>
    %cst_34 = arith.constant 0.000000e+00 : f32
    %161 = vector.broadcast %cst_34 : f32 to vector<8x32xf32>
    %162 = arith.maximumf %160, %161 : vector<8x32xf32>
    %c0_35 = arith.constant 0 : index
    %c0_36 = arith.constant 0 : index
    %163 = vector.load %arg6[%c0_35, %c0_36] : memref<8x32xf32, #tpu.memory_space<vmem>>, vector<8x32xf32>
    tpu.vector_store %arg6[%c0_35, %c0_36], %162 {strides = array<i32>} : memref<8x32xf32, #tpu.memory_space<vmem>>, vector<8x32xf32>,
    return
  }
}

</mosaic_0001>

<bundles_post_ra>
// kernel: rnn_forward.1
= control target key start
LH: loop header
LB: loop body
LE: loop exit
PB: predicated region body
PF: predicated region fallthrough
CT: control target
= control target key end

     0   :  { %14 = vsyncpa [#allocation3], 0  ;;  %s1203_s0 = inlined_call_operand.hbm [shape: f32[8,32], index: 0, kind: input, shape index: {}]   ;;  %s1204_s1 = inlined_call_operand.hbm [shape: f32[32,64], index: 1, kind: input, shape index: {}]   ;;  %s1205_s2 = inlined_call_operand.hbm [shape: f32[16,64], index: 2, kind: input, shape index: {}]   ;;  %s1206_s3 = inlined_call_operand.vmem [shape: f32[1,64], index: 3, kind: input, shape index: {}]   ;;  %s1207_s4 = inlined_call_operand.hbm [shape: f32[16,32], index: 4, kind: input, shape index: {}]   ;;  %s1208_s5 = inlined_call_operand.vmem [shape: f32[1,32], index: 5, kind: input, shape index: {}]   ;;  %s1209_s6 = inlined_call_operand.hbm [shape: f32[8,32], index: 6, kind: output, shape index: {0}]   ;;  %s1210_s7 = inlined_call_operand.hbm [shape: f32[1,16], index: 7, kind: output, shape index: {1}]   ;;  %s1211_s8 = inlined_call_operand.hbm [shape: f32[1,16], index: 8, kind: output, shape index: {2}]  }
   0x1   :  { %15 = vsyncpa [#allocation6], 0 }
   0x2   :  { %16 = vsyncpa [#allocation9], 0 }
   0x3   :  { %17 = vsyncpa [#allocation4], 0  ;;  %s34_s29 = sshll.u32 %s1204_s1, 4  ;;  %s35_s29 = int_to_ptr.hbm [resolvable:$true] %s34_s29 }
   0x4   :  { %18 = vsyncpa [#allocation12], 0  ;;  %s1059_s30 = smov [#allocation5]   ;;  %s24_s12 = sshll.u32 %s1203_s0, 4  ;;  %s25_s12 = int_to_ptr.hbm [resolvable:$true] %s24_s12 }
   0x5   :  { %s36_s9 = sshll.u32 %s1059_s30, 4  ;;  %s1060_s13 = smov 128   ;;  %s37_s9 = int_to_ptr.vmem [resolvable:$true] %s36_s9 }
   0x6   :  { %s1061_s14 = smov 8   ;;  %s1062_s15 = smov [#allocation2]  }
   0x7   :  { %42 = dma.hbm_to_vmem [thread:$0]  %s35_s29, 512, %s37_s9, [#allocation6], %s1060_s13, %s1060_s13, %s1061_s14  }
   0x8   :  { %s26_s16 = sshll.u32 %s1062_s15, 4  ;;  %s47_s19 = sshll.u32 %s1205_s2, 4  ;;  %s27_s16 = int_to_ptr.vmem [resolvable:$true] %s26_s16  ;;  %s48_s19 = int_to_ptr.hbm [resolvable:$true] %s47_s19 }
   0x9   :  { %29 = dma.hbm_to_vmem [thread:$0]  %s25_s12, 128, %s27_s16, [#allocation3]  }
   0xa   :  { %s62_s21 = sshll.u32 %s1207_s4, 4  ;;  %s1063_s22 = smov [#allocation7]   ;;  %s63_s21 = int_to_ptr.hbm [resolvable:$true] %s62_s21 }
   0xb   :  { %s49_s23 = sshll.u32 %s1063_s22, 4  ;;  %s1064_s0 = smov [#allocation8]   ;;  %s50_s23 = int_to_ptr.vmem [resolvable:$true] %s49_s23 }
   0xc   :  { %55 = dma.hbm_to_vmem [thread:$0]  %s48_s19, 256, %s50_s23, [#allocation6], %s1060_s13, %s1060_s13, %s1061_s14  }
   0xd   :  { %s64_s24 = sshll.u32 %s1064_s0, 4  ;;  %s65_s24 = int_to_ptr.vmem [resolvable:$true] %s64_s24 }
   0xe   :  { %70 = dma.hbm_to_vmem [thread:$0]  %s63_s21, 256, %s65_s24, [#allocation9], %s1060_s13, %s1060_s13, %s1061_s14  }
   0xf   :  { %1049 = dma.done.wait [#allocation3], 128  }
  0x10   :  { %1050 = vsyncadd [#allocation3], 4294967168 }
  0x11   :  { %1051 = dma.done.wait [#allocation6], 768  }
  0x12   :  { %1052 = vsyncadd [#allocation6], 4294966528 }
  0x13   :  { %1053 = dma.done.wait [#allocation9], 256  }
  0x14   :  { %1054 = vsyncadd [#allocation9], 4294967040  ;;  %v93_v0 = vld [vmem:[#allocation5 + $0x18] sm:$0xff]  ;;  %v92_v1 = vld [vmem:[#allocation5 + $0x10] sm:$0xff]  ;;  %vm98_vm0 = vcmask 261120   ;;  %v1065_v7 = vmov 0.0  }
  0x15   :  { %114 = vmatpush.msra.mxu0 %v93_v0  ;;  %v123_v2 = vld [vmem:[#allocation7 + $0x8] sm:$0xff]  ;;  %v122_v4 = vld [vmem:[#allocation7] sm:$0xff]  ;;  %v89_v6 = vld [vmem:[#allocation2] sm:$0xff]  ;;  %s1066_s25 = smov 96   ;;  %s1068_s26 = smov 32   ;;  %vm124_vm5 = vcmask 130048  }
  0x16   :  { %v91_v3 = vld [vmem:[#allocation5 + $0x8] sm:$0xff]  ;;  %142 = vmatpush.msra.mxu1 %v123_v2  ;;  %205 = vmatpush.msra.mxu2 %v123_v2  ;;  %v90_v5 = vld [vmem:[#allocation5] sm:$0xff]  ;;  %v815_v8 = vld [vmem:[%s1206_s3] ss:$0 sm:$0xff]  ;;  %s1067_s3 = smov 16   ;;  %s1069_s27 = smov 80  }
  0x17   :  { %115 = vmatpush.msra.mxu0 %v92_v1  ;;  %275 = vmatpush.msra.mxu3 %v123_v2  ;;  %vm686_vm14 = vcmask 1040384   ;;  %vm688_vm15 = vcmask 1041408   ;;  %s1070_s28 = smov 112   ;;  %s1071_s29 = smov [#allocation11]  }
  0x18   :  { %143 = vmatpush.msra.mxu1 %v122_v4  ;;  %206 = vmatpush.msra.mxu2 %v122_v4  ;;  %s749_s30 = sshll.u32 %s1071_s29, 4  ;;  %s751_s11 = sshll.u32 %s1210_s7, 4  ;;  %s750_s30 = int_to_ptr.vmem [resolvable:$true] %s749_s30  ;;  %s752_s11 = int_to_ptr.hbm [resolvable:$true] %s751_s11 }
  0x19   :  { %116 = vmatpush.msra.mxu0 %v91_v3  ;;  %144 = vmatmul.f32.vlgmr.msra.gmra.mxu1 %v1065_v7  ;;  %s1072_s12 = smov [#allocation13]   ;;  %s762_s16 = sshll.u32 %s1211_s8, 4  ;;  %s763_s16 = int_to_ptr.hbm [resolvable:$true] %s762_s16 }
  0x1a   :  { %276 = vmatpush.msra.mxu3 %v122_v4  ;;  %345 = vmatpush.msrb.mxu1 %v123_v2  ;;  %s760_s13 = sshll.u32 %s1072_s12, 4  ;;  %s1073_s19 = smov [#allocation10]   ;;  %s761_s13 = int_to_ptr.vmem [resolvable:$true] %s760_s13 }
  0x1b   :  { %117 = vmatpush.msra.mxu0 %v90_v5  ;;  %415 = vmatpush.msrb.mxu2 %v123_v2  ;;  %s738_s1 = sshll.u32 %s1073_s19, 4  ;;  %s740_s21 = sshll.u32 %s1209_s6, 4  ;;  %s739_s1 = int_to_ptr.vmem [resolvable:$true] %s738_s1  ;;  %s741_s21 = int_to_ptr.hbm [resolvable:$true] %s740_s21 }
  0x1c   :  { %783 = vmatmul.msk.f32.vlgmr.msra.gmra.mxu0 %vm98_vm0, %v89_v6  ;;  %346 = vmatpush.msrb.mxu1 %v122_v4 }
  0x1d   :  { %416 = vmatpush.msrb.mxu2 %v122_v4  ;;  %485 = vmatpush.msrb.mxu3 %v123_v2 }
  0x1e   :  { %555 = vmatpush.msrb.mxu0 %v123_v2  ;;  %625 = vmatpush.msra.mxu1 %v123_v2 }
  0x1f   :  { %486 = vmatpush.msrb.mxu3 %v122_v4 }
  0x20   :  { %556 = vmatpush.msrb.mxu0 %v122_v4  ;;  %626 = vmatpush.msra.mxu1 %v122_v4 }
  0x96   :  { %v145_v10 = vpop.f32.mrf.mxu1 }
  0x99   :  { %v119_v9 = vpop.f32.mrf.mxu0 }
  0x9a   :  { %v1135_v11 = vadd.f32 %v815_v8, %v119_v9 }
  0x9c   :  { %v148_v12 = vadd.f32 %v145_v10, %v1135_v11 }
  0x9e   :  { %817 = vtanh.f32 %v148_v12  ;;  %v784_v14 = vmul.f32 -1.442695, %v148_v12 }
  0xa0   :  { %819 = vpow2.f32 %v784_v14 }
  0xa4   :  { %v818_v13 = vpop.eup %817 }
  0xa5   :  { %171 = vrot.lane.b32.xlu0 %v818_v13, %s1066_s25 }
  0xa6   :  { %v820_v15 = vpop.eup %819 }
  0xa7   :  { %v152_v16 = vadd.f32 1.0, %v820_v15 }
  0xa9   :  { %821 = vrcp.f32 %v152_v16  ;;  %v164_v22 = vand.u32 2147483648, %v152_v16  ;;  %vm158_vm2 = vweird.f32 %v152_v16  ;;  %v162_v23 = vand.u32 2147483647, %v152_v16 }
  0xab   :  { %v165_v25 = vor.u32 1.1754944e-38, %v164_v22  ;;  %vm163_vm4 = vcmp.eq.f32.partialorder %v162_v23, 8.507059e+37 }
  0xaf   :  { %v822_v17 = vpop.eup %821 }
  0xb0   :  { %v154_v18 = vmul.f32 %v822_v17, %v152_v16  ;;  %vm159_vm1 = vweird.f32 %v822_v17 }
  0xb1   :  { %vm160_vm3 = vmor %vm158_vm2, %vm159_vm1 }
  0xb2   :  { %v155_v19 = vsub.f32 1.0, %v154_v18 }
  0xb4   :  { %v156_v20 = vmul.f32 %v822_v17, %v155_v19 }
  0xb6   :  { %v157_v21 = vadd.f32 %v822_v17, %v156_v20 }
  0xb8   :  { %v161_v24 = vsel %vm160_vm3, %v822_v17, %v157_v21 }
  0xb9   :  { %v166_v27 = vsel %vm163_vm4, %v165_v25, %v161_v24 }
  0xba   :  { %v169_v29 = vmul.f32 0.0, %v166_v27 }
 0x117   :  { %v172_v26 = vpop.permute.xlu0 %171 }
 0x118   :  { %v174_v28 = vmul.f32 %v172_v26, %v166_v27 }
 0x11a   :  { %176 = vrot.lane.b32.xlu0 %v174_v28, %s1067_s3 }
 0x18c   :  { %v177_v30 = vpop.permute.xlu0 %176 }
 0x18d   :  { %v179_v31 = vadd.f32 %v177_v30, %v169_v29 }
 0x18f   :  { %823 = vtanh.f32 %v179_v31  ;;  %v236_v55 = vrot.slane %v179_v31, 7 }
 0x195   :  { %v824_v32 = vpop.eup %823 }
 0x196   :  { %182 = vrot.lane.b32.xlu1 %v824_v32, %s1068_s26 }
 0x208   :  { %v183_v33 = vpop.permute.xlu1 %182 }
 0x209   :  { %v1141_v34 = vmul.f32 %v183_v33, %v166_v27 }
 0x20b   :  { %187 = vrot.lane.b32.xlu1 %v1141_v34, %s1069_s27 }
 0x27d   :  { %v188_v35 = vpop.permute.xlu1 %187 }
 0x27e   :  { %785 = vmatmul.msk.f32.vlgmr.msra.gmra.mxu2 %vm124_vm5, %v188_v35 }
 0x301   :  { %v208_v36 = vpop.f32.mrf.mxu2 }
 0x302   :  { %v212_v37 = vrot.slane %v208_v36, 7 }
 0x304   :  { %v214_v38 = vadd.f32 %v212_v37, %v1135_v11 }
 0x306   :  { %825 = vtanh.f32 %v214_v38  ;;  %v786_v40 = vmul.f32 -1.442695, %v214_v38 }
 0x308   :  { %827 = vpow2.f32 %v786_v40 }
 0x30c   :  { %v826_v39 = vpop.eup %825 }
 0x30d   :  { %240 = vrot.lane.b32.xlu2 %v826_v39, %s1066_s25 }
 0x30e   :  { %v828_v41 = vpop.eup %827 }
 0x30f   :  { %v218_v42 = vadd.f32 1.0, %v828_v41 }
 0x311   :  { %829 = vrcp.f32 %v218_v42  ;;  %v230_v48 = vand.u32 2147483648, %v218_v42  ;;  %vm224_vm7 = vweird.f32 %v218_v42  ;;  %v228_v49 = vand.u32 2147483647, %v218_v42 }
 0x313   :  { %v231_v51 = vor.u32 1.1754944e-38, %v230_v48  ;;  %vm229_vm9 = vcmp.eq.f32.partialorder %v228_v49, 8.507059e+37 }
 0x317   :  { %v830_v43 = vpop.eup %829 }
 0x318   :  { %v220_v44 = vmul.f32 %v830_v43, %v218_v42  ;;  %vm225_vm6 = vweird.f32 %v830_v43 }
 0x319   :  { %vm226_vm8 = vmor %vm224_vm7, %vm225_vm6  ;;  %vm690_vm6 = vcmask 1042432  }
 0x31a   :  { %v221_v45 = vsub.f32 1.0, %v220_v44 }
 0x31c   :  { %v222_v46 = vmul.f32 %v830_v43, %v221_v45 }
 0x31e   :  { %v223_v47 = vadd.f32 %v830_v43, %v222_v46 }
 0x320   :  { %v227_v50 = vsel %vm226_vm8, %v830_v43, %v223_v47 }
 0x321   :  { %v232_v53 = vsel %vm229_vm9, %v231_v51, %v227_v50 }
 0x322   :  { %v238_v56 = vmul.f32 %v236_v55, %v232_v53 }
 0x367   :  { %v241_v52 = vpop.permute.xlu2 %240 }
 0x368   :  { %v243_v54 = vmul.f32 %v241_v52, %v232_v53 }
 0x36a   :  { %245 = vrot.lane.b32.xlu2 %v243_v54, %s1067_s3 }
 0x3c4   :  { %v246_v57 = vpop.permute.xlu2 %245 }
 0x3c5   :  { %v248_v58 = vadd.f32 %v246_v57, %v238_v56 }
 0x3c7   :  { %831 = vtanh.f32 %v248_v58  ;;  %v306_v20 = vrot.slane %v248_v58, 7 }
 0x3cd   :  { %v832_v59 = vpop.eup %831 }
 0x3ce   :  { %251 = vrot.lane.b32.xlu0 %v832_v59, %s1068_s26 }
 0x440   :  { %v252_v60 = vpop.permute.xlu0 %251 }
 0x441   :  { %v254_v61 = vmul.f32 %v252_v60, %v232_v53 }
 0x443   :  { %v256_v62 = vrot.slane %v254_v61, 1  ;;  %v687_v27 = vsel %vm686_vm14, %v1141_v34, %v254_v61 }
 0x445   :  { %257 = vrot.lane.b32.xlu1 %v256_v62, %s1069_s27 }
 0x4b7   :  { %v258_v63 = vpop.permute.xlu1 %257 }
 0x4b8   :  { %787 = vmatmul.msk.f32.vlgmr.msra.gmra.mxu3 %vm124_vm5, %v258_v63 }
 0x53b   :  { %v278_v0 = vpop.f32.mrf.mxu3 }
 0x53c   :  { %v282_v1 = vrot.slane %v278_v0, 6 }
 0x53e   :  { %v284_v2 = vadd.f32 %v282_v1, %v1135_v11 }
 0x540   :  { %833 = vtanh.f32 %v284_v2  ;;  %v788_v4 = vmul.f32 -1.442695, %v284_v2 }
 0x542   :  { %835 = vpow2.f32 %v788_v4 }
 0x546   :  { %v834_v3 = vpop.eup %833 }
 0x547   :  { %310 = vrot.lane.b32.xlu2 %v834_v3, %s1066_s25 }
 0x548   :  { %v836_v5 = vpop.eup %835 }
 0x549   :  { %v288_v6 = vadd.f32 1.0, %v836_v5 }
 0x54b   :  { %837 = vrcp.f32 %v288_v6  ;;  %v300_v13 = vand.u32 2147483648, %v288_v6  ;;  %vm294_vm11 = vweird.f32 %v288_v6  ;;  %v298_v14 = vand.u32 2147483647, %v288_v6 }
 0x54d   :  { %v301_v16 = vor.u32 1.1754944e-38, %v300_v13  ;;  %vm299_vm13 = vcmp.eq.f32.partialorder %v298_v14, 8.507059e+37 }
 0x551   :  { %v838_v7 = vpop.eup %837 }
 0x552   :  { %v290_v8 = vmul.f32 %v838_v7, %v288_v6  ;;  %vm295_vm10 = vweird.f32 %v838_v7 }
 0x553   :  { %vm296_vm12 = vmor %vm294_vm11, %vm295_vm10  ;;  %vm692_vm11 = vcmask 1043456  }
 0x554   :  { %v291_v9 = vsub.f32 1.0, %v290_v8 }
 0x556   :  { %v292_v10 = vmul.f32 %v838_v7, %v291_v9 }
 0x558   :  { %v293_v12 = vadd.f32 %v838_v7, %v292_v10 }
 0x55a   :  { %v297_v15 = vsel %vm296_vm12, %v838_v7, %v293_v12 }
 0x55b   :  { %v302_v18 = vsel %vm299_vm13, %v301_v16, %v297_v15 }
 0x55c   :  { %v308_v21 = vmul.f32 %v306_v20, %v302_v18 }
 0x5a1   :  { %v311_v17 = vpop.permute.xlu2 %310 }
 0x5a2   :  { %v313_v19 = vmul.f32 %v311_v17, %v302_v18 }
 0x5a4   :  { %315 = vrot.lane.b32.xlu0 %v313_v19, %s1067_s3 }
 0x616   :  { %v316_v22 = vpop.permute.xlu0 %315 }
 0x617   :  { %v318_v23 = vadd.f32 %v316_v22, %v308_v21 }
 0x619   :  { %839 = vtanh.f32 %v318_v23  ;;  %v376_v50 = vrot.slane %v318_v23, 7 }
 0x61f   :  { %v840_v24 = vpop.eup %839 }
 0x620   :  { %321 = vrot.lane.b32.xlu1 %v840_v24, %s1068_s26 }
 0x692   :  { %v322_v25 = vpop.permute.xlu1 %321 }
 0x693   :  { %v324_v26 = vmul.f32 %v322_v25, %v302_v18 }
 0x695   :  { %v326_v28 = vrot.slane %v324_v26, 2  ;;  %v689_v29 = vsel %vm688_vm15, %v687_v27, %v324_v26 }
 0x697   :  { %327 = vrot.lane.b32.xlu2 %v326_v28, %s1069_s27 }
 0x6f1   :  { %v328_v30 = vpop.permute.xlu2 %327 }
 0x6f2   :  { %789 = vmatmul.msk.f32.vlgmr.msrb.gmra.mxu1 %vm124_vm5, %v328_v30 }
 0x76f   :  { %v348_v31 = vpop.f32.mrf.mxu1 }
 0x770   :  { %v352_v32 = vrot.slane %v348_v31, 5 }
 0x772   :  { %v354_v33 = vadd.f32 %v352_v32, %v1135_v11 }
 0x774   :  { %841 = vtanh.f32 %v354_v33  ;;  %v790_v36 = vmul.f32 -1.442695, %v354_v33 }
 0x776   :  { %843 = vpow2.f32 %v790_v36 }
 0x77a   :  { %v842_v35 = vpop.eup %841 }
 0x77b   :  { %380 = vrot.lane.b32.xlu0 %v842_v35, %s1066_s25 }
 0x77c   :  { %v844_v37 = vpop.eup %843 }
 0x77d   :  { %v358_v38 = vadd.f32 1.0, %v844_v37 }
 0x77f   :  { %845 = vrcp.f32 %v358_v38  ;;  %v370_v43 = vand.u32 2147483648, %v358_v38  ;;  %vm364_vm2 = vweird.f32 %v358_v38  ;;  %v368_v44 = vand.u32 2147483647, %v358_v38 }
 0x781   :  { %v371_v46 = vor.u32 1.1754944e-38, %v370_v43  ;;  %vm369_vm4 = vcmp.eq.f32.partialorder %v368_v44, 8.507059e+37 }
 0x785   :  { %v846_v34 = vpop.eup %845 }
 0x786   :  { %v360_v39 = vmul.f32 %v846_v34, %v358_v38  ;;  %vm365_vm1 = vweird.f32 %v846_v34 }
 0x787   :  { %vm366_vm3 = vmor %vm364_vm2, %vm365_vm1  ;;  %vm694_vm1 = vcmask 1044480  }
 0x788   :  { %v361_v40 = vsub.f32 1.0, %v360_v39 }
 0x78a   :  { %v362_v41 = vmul.f32 %v846_v34, %v361_v40 }
 0x78c   :  { %v363_v42 = vadd.f32 %v846_v34, %v362_v41 }
 0x78e   :  { %v367_v45 = vsel %vm366_vm3, %v846_v34, %v363_v42 }
 0x78f   :  { %v372_v48 = vsel %vm369_vm4, %v371_v46, %v367_v45 }
 0x790   :  { %v378_v51 = vmul.f32 %v376_v50, %v372_v48 }
 0x7ed   :  { %v381_v47 = vpop.permute.xlu0 %380 }
 0x7ee   :  { %v383_v49 = vmul.f32 %v381_v47, %v372_v48 }
 0x7f0   :  { %385 = vrot.lane.b32.xlu1 %v383_v49, %s1067_s3 }
 0x862   :  { %v386_v52 = vpop.permute.xlu1 %385 }
 0x863   :  { %v388_v53 = vadd.f32 %v386_v52, %v378_v51 }
 0x865   :  { %847 = vtanh.f32 %v388_v53  ;;  %v446_v16 = vrot.slane %v388_v53, 7 }
 0x86b   :  { %v848_v54 = vpop.eup %847 }
 0x86c   :  { %391 = vrot.lane.b32.xlu2 %v848_v54, %s1068_s26 }
 0x8c6   :  { %v392_v55 = vpop.permute.xlu2 %391 }
 0x8c7   :  { %v394_v56 = vmul.f32 %v392_v55, %v372_v48 }
 0x8c9   :  { %v396_v57 = vrot.slane %v394_v56, 3  ;;  %v691_v58 = vsel %vm690_vm6, %v689_v29, %v394_v56 }
 0x8cb   :  { %397 = vrot.lane.b32.xlu0 %v396_v57, %s1069_s27 }
 0x93d   :  { %v398_v59 = vpop.permute.xlu0 %397 }
 0x93e   :  { %791 = vmatmul.msk.f32.vlgmr.msrb.gmra.mxu2 %vm124_vm5, %v398_v59 }
 0x9c1   :  { %v418_v60 = vpop.f32.mrf.mxu2 }
 0x9c2   :  { %v422_v61 = vrot.slane %v418_v60, 4 }
 0x9c4   :  { %v424_v62 = vadd.f32 %v422_v61, %v1135_v11 }
 0x9c6   :  { %849 = vtanh.f32 %v424_v62  ;;  %v792_v0 = vmul.f32 -1.442695, %v424_v62 }
 0x9c8   :  { %851 = vpow2.f32 %v792_v0 }
 0x9cc   :  { %v850_v63 = vpop.eup %849 }
 0x9cd   :  { %450 = vrot.lane.b32.xlu1 %v850_v63, %s1066_s25 }
 0x9ce   :  { %v852_v1 = vpop.eup %851 }
 0x9cf   :  { %v428_v2 = vadd.f32 1.0, %v852_v1 }
 0x9d1   :  { %853 = vrcp.f32 %v428_v2  ;;  %v440_v8 = vand.u32 2147483648, %v428_v2  ;;  %vm434_vm8 = vweird.f32 %v428_v2  ;;  %v438_v9 = vand.u32 2147483647, %v428_v2 }
 0x9d3   :  { %v441_v12 = vor.u32 1.1754944e-38, %v440_v8  ;;  %vm439_vm10 = vcmp.eq.f32.partialorder %v438_v9, 8.507059e+37 }
 0x9d7   :  { %v854_v3 = vpop.eup %853 }
 0x9d8   :  { %v430_v4 = vmul.f32 %v854_v3, %v428_v2  ;;  %vm435_vm7 = vweird.f32 %v854_v3 }
 0x9d9   :  { %vm436_vm9 = vmor %vm434_vm8, %vm435_vm7  ;;  %vm696_vm7 = vcmask 1045504  }
 0x9da   :  { %v431_v5 = vsub.f32 1.0, %v430_v4 }
 0x9dc   :  { %v432_v6 = vmul.f32 %v854_v3, %v431_v5 }
 0x9de   :  { %v433_v7 = vadd.f32 %v854_v3, %v432_v6 }
 0x9e0   :  { %v437_v10 = vsel %vm436_vm9, %v854_v3, %v433_v7 }
 0x9e1   :  { %v442_v14 = vsel %vm439_vm10, %v441_v12, %v437_v10 }
 0x9e2   :  { %v448_v17 = vmul.f32 %v446_v16, %v442_v14 }
 0xa3f   :  { %v451_v13 = vpop.permute.xlu1 %450 }
 0xa40   :  { %v453_v15 = vmul.f32 %v451_v13, %v442_v14 }
 0xa42   :  { %455 = vrot.lane.b32.xlu2 %v453_v15, %s1067_s3 }
 0xa9c   :  { %v456_v18 = vpop.permute.xlu2 %455 }
 0xa9d   :  { %v458_v19 = vadd.f32 %v456_v18, %v448_v17 }
 0xa9f   :  { %855 = vtanh.f32 %v458_v19  ;;  %v516_v45 = vrot.slane %v458_v19, 7 }
 0xaa5   :  { %v856_v20 = vpop.eup %855 }
 0xaa6   :  { %461 = vrot.lane.b32.xlu0 %v856_v20, %s1068_s26 }
 0xb18   :  { %v462_v21 = vpop.permute.xlu0 %461 }
 0xb19   :  { %v464_v22 = vmul.f32 %v462_v21, %v442_v14 }
 0xb1b   :  { %v466_v23 = vrot.slane %v464_v22, 4  ;;  %v693_v24 = vsel %vm692_vm11, %v691_v58, %v464_v22 }
 0xb1d   :  { %467 = vrot.lane.b32.xlu1 %v466_v23, %s1069_s27 }
 0xb8f   :  { %v468_v25 = vpop.permute.xlu1 %467 }
 0xb90   :  { %793 = vmatmul.msk.f32.vlgmr.msrb.gmra.mxu3 %vm124_vm5, %v468_v25 }
 0xc13   :  { %v488_v26 = vpop.f32.mrf.mxu3 }
 0xc14   :  { %v492_v27 = vrot.slane %v488_v26, 3 }
 0xc16   :  { %v494_v28 = vadd.f32 %v492_v27, %v1135_v11 }
 0xc18   :  { %857 = vtanh.f32 %v494_v28  ;;  %v794_v30 = vmul.f32 -1.442695, %v494_v28 }
 0xc1a   :  { %859 = vpow2.f32 %v794_v30 }
 0xc1e   :  { %v858_v29 = vpop.eup %857 }
 0xc1f   :  { %520 = vrot.lane.b32.xlu2 %v858_v29, %s1066_s25 }
 0xc20   :  { %v860_v31 = vpop.eup %859 }
 0xc21   :  { %v498_v32 = vadd.f32 1.0, %v860_v31 }
 0xc23   :  { %861 = vrcp.f32 %v498_v32  ;;  %v510_v34 = vand.u32 2147483648, %v498_v32  ;;  %vm504_vm13 = vweird.f32 %v498_v32  ;;  %v508_v39 = vand.u32 2147483647, %v498_v32 }
 0xc25   :  { %v511_v41 = vor.u32 1.1754944e-38, %v510_v34  ;;  %vm509_vm15 = vcmp.eq.f32.partialorder %v508_v39, 8.507059e+37 }
 0xc29   :  { %v862_v33 = vpop.eup %861 }
 0xc2a   :  { %v500_v35 = vmul.f32 %v862_v33, %v498_v32  ;;  %vm505_vm12 = vweird.f32 %v862_v33 }
 0xc2b   :  { %vm506_vm14 = vmor %vm504_vm13, %vm505_vm12  ;;  %vm698_vm12 = vcmask 1046528   ;;  %vm679_vm13 = vcmask 130055  }
 0xc2c   :  { %v501_v36 = vsub.f32 1.0, %v500_v35 }
 0xc2e   :  { %v502_v37 = vmul.f32 %v862_v33, %v501_v36 }
 0xc30   :  { %v503_v38 = vadd.f32 %v862_v33, %v502_v37 }
 0xc32   :  { %v507_v40 = vsel %vm506_vm14, %v862_v33, %v503_v38 }
 0xc33   :  { %v512_v43 = vsel %vm509_vm15, %v511_v41, %v507_v40 }
 0xc34   :  { %v518_v46 = vmul.f32 %v516_v45, %v512_v43 }
 0xc79   :  { %v521_v42 = vpop.permute.xlu2 %520 }
 0xc7a   :  { %v523_v44 = vmul.f32 %v521_v42, %v512_v43 }
 0xc7c   :  { %525 = vrot.lane.b32.xlu0 %v523_v44, %s1067_s3 }
 0xcee   :  { %v526_v47 = vpop.permute.xlu0 %525 }
 0xcef   :  { %v528_v48 = vadd.f32 %v526_v47, %v518_v46 }
 0xcf1   :  { %863 = vtanh.f32 %v528_v48  ;;  %v586_v10 = vrot.slane %v528_v48, 7  ;;  %v701_v48 = vld [vmem:[#allocation8 + $0x8] sm:$0xff] }
 0xcf2   :  { %725 = vmatpush.msra.mxu2 %v701_v48 }
 0xcf7   :  { %v864_v49 = vpop.eup %863 }
 0xcf8   :  { %531 = vrot.lane.b32.xlu1 %v864_v49, %s1068_s26  ;;  %v700_v49 = vld [vmem:[#allocation8] sm:$0xff] }
 0xcf9   :  { %726 = vmatpush.msra.mxu2 %v700_v49 }
 0xd6a   :  { %v532_v50 = vpop.permute.xlu1 %531 }
 0xd6b   :  { %v534_v51 = vmul.f32 %v532_v50, %v512_v43 }
 0xd6d   :  { %v536_v52 = vrot.slane %v534_v51, 5  ;;  %v695_v53 = vsel %vm694_vm1, %v693_v24, %v534_v51 }
 0xd6f   :  { %537 = vrot.lane.b32.xlu2 %v536_v52, %s1069_s27  ;;  %v816_v52 = vld [vmem:[%s1208_s5] ss:$0 sm:$0xff] }
 0xdc9   :  { %v538_v54 = vpop.permute.xlu2 %537 }
 0xdca   :  { %795 = vmatmul.msk.f32.vlgmr.msrb.gmra.mxu0 %vm124_vm5, %v538_v54 }
 0xe47   :  { %v558_v55 = vpop.f32.mrf.mxu0 }
 0xe48   :  { %v562_v56 = vrot.slane %v558_v55, 2 }
 0xe4a   :  { %v564_v57 = vadd.f32 %v562_v56, %v1135_v11 }
 0xe4c   :  { %865 = vtanh.f32 %v564_v57  ;;  %v796_v59 = vmul.f32 -1.442695, %v564_v57 }
 0xe4e   :  { %867 = vpow2.f32 %v796_v59 }
 0xe52   :  { %v866_v58 = vpop.eup %865 }
 0xe53   :  { %590 = vrot.lane.b32.xlu0 %v866_v58, %s1066_s25 }
 0xe54   :  { %v868_v60 = vpop.eup %867 }
 0xe55   :  { %v568_v61 = vadd.f32 1.0, %v868_v60 }
 0xe57   :  { %869 = vrcp.f32 %v568_v61  ;;  %v580_v3 = vand.u32 2147483648, %v568_v61  ;;  %vm574_vm3 = vweird.f32 %v568_v61  ;;  %v578_v4 = vand.u32 2147483647, %v568_v61 }
 0xe59   :  { %v581_v6 = vor.u32 1.1754944e-38, %v580_v3  ;;  %vm579_vm6 = vcmp.eq.f32.partialorder %v578_v4, 8.507059e+37 }
 0xe5d   :  { %v870_v62 = vpop.eup %869 }
 0xe5e   :  { %v570_v63 = vmul.f32 %v870_v62, %v568_v61  ;;  %vm575_vm2 = vweird.f32 %v870_v62 }
 0xe5f   :  { %vm576_vm4 = vmor %vm574_vm3, %vm575_vm2 }
 0xe60   :  { %v571_v0 = vsub.f32 1.0, %v570_v63 }
 0xe62   :  { %v572_v1 = vmul.f32 %v870_v62, %v571_v0 }
 0xe64   :  { %v573_v2 = vadd.f32 %v870_v62, %v572_v1 }
 0xe66   :  { %v577_v5 = vsel %vm576_vm4, %v870_v62, %v573_v2 }
 0xe67   :  { %v582_v8 = vsel %vm579_vm6, %v581_v6, %v577_v5 }
 0xe68   :  { %v588_v12 = vmul.f32 %v586_v10, %v582_v8 }
 0xec5   :  { %v591_v7 = vpop.permute.xlu0 %590 }
 0xec6   :  { %v593_v9 = vmul.f32 %v591_v7, %v582_v8 }
 0xec8   :  { %595 = vrot.lane.b32.xlu1 %v593_v9, %s1067_s3 }
 0xf3a   :  { %v596_v13 = vpop.permute.xlu1 %595 }
 0xf3b   :  { %v598_v14 = vadd.f32 %v596_v13, %v588_v12 }
 0xf3d   :  { %871 = vtanh.f32 %v598_v14  ;;  %v656_v39 = vrot.slane %v598_v14, 7 }
 0xf43   :  { %v872_v15 = vpop.eup %871 }
 0xf44   :  { %601 = vrot.lane.b32.xlu2 %v872_v15, %s1068_s26 }
 0xf9e   :  { %v602_v16 = vpop.permute.xlu2 %601 }
 0xf9f   :  { %v604_v17 = vmul.f32 %v602_v16, %v582_v8 }
 0xfa1   :  { %v606_v18 = vrot.slane %v604_v17, 6  ;;  %v697_v19 = vsel %vm696_vm7, %v695_v53, %v604_v17 }
 0xfa3   :  { %607 = vrot.lane.b32.xlu0 %v606_v18, %s1069_s27 }
0x1015   :  { %v608_v20 = vpop.permute.xlu0 %607 }
0x1016   :  { %797 = vmatmul.msk.f32.vlgmr.msra.gmra.mxu1 %vm124_vm5, %v608_v20 }
0x1093   :  { %v628_v21 = vpop.f32.mrf.mxu1 }
0x1094   :  { %v632_v22 = vrot.slane %v628_v21, 1 }
0x1096   :  { %v634_v23 = vadd.f32 %v632_v22, %v1135_v11 }
0x1098   :  { %873 = vtanh.f32 %v634_v23  ;;  %v798_v25 = vmul.f32 -1.442695, %v634_v23 }
0x109a   :  { %875 = vpow2.f32 %v798_v25 }
0x109e   :  { %v874_v24 = vpop.eup %873 }
0x109f   :  { %660 = vrot.lane.b32.xlu1 %v874_v24, %s1066_s25 }
0x10a0   :  { %v876_v26 = vpop.eup %875 }
0x10a1   :  { %v638_v27 = vadd.f32 1.0, %v876_v26 }
0x10a3   :  { %877 = vrcp.f32 %v638_v27  ;;  %v650_v33 = vand.u32 2147483648, %v638_v27  ;;  %vm644_vm9 = vweird.f32 %v638_v27  ;;  %v648_v35 = vand.u32 2147483647, %v638_v27 }
0x10a5   :  { %v651_v36 = vor.u32 1.1754944e-38, %v650_v33  ;;  %vm649_vm11 = vcmp.eq.f32.partialorder %v648_v35, 8.507059e+37 }
0x10a9   :  { %v878_v28 = vpop.eup %877 }
0x10aa   :  { %v640_v29 = vmul.f32 %v878_v28, %v638_v27  ;;  %vm645_vm8 = vweird.f32 %v878_v28 }
0x10ab   :  { %vm646_vm10 = vmor %vm644_vm9, %vm645_vm8 }
0x10ac   :  { %v641_v30 = vsub.f32 1.0, %v640_v29 }
0x10ae   :  { %v642_v31 = vmul.f32 %v878_v28, %v641_v30 }
0x10b0   :  { %v643_v32 = vadd.f32 %v878_v28, %v642_v31 }
0x10b2   :  { %v647_v11 = vsel %vm646_vm10, %v878_v28, %v643_v32 }
0x10b3   :  { %v652_v38 = vsel %vm649_vm11, %v651_v36, %v647_v11 }
0x10b4   :  { %v658_v40 = vmul.f32 %v656_v39, %v652_v38 }
0x1111   :  { %v661_v37 = vpop.permute.xlu1 %660 }
0x1112   :  { %v663_v34 = vmul.f32 %v661_v37, %v652_v38 }
0x1114   :  { %665 = vrot.lane.b32.xlu2 %v663_v34, %s1067_s3 }
0x116e   :  { %v666_v41 = vpop.permute.xlu2 %665 }
0x116f   :  { %v668_v42 = vadd.f32 %v666_v41, %v658_v40 }
0x1171   :  { %879 = vtanh.f32 %v668_v42 }
0x1177   :  { %v880_v43 = vpop.eup %879 }
0x1178   :  { %671 = vrot.lane.b32.xlu0 %v880_v43, %s1068_s26 }
0x1180   :  { %682 = vrot.lane.b32.xlu0 %v668_v42, %s1070_s28 }
0x11ea   :  { %v672_v44 = vpop.permute.xlu0 %671 }
0x11eb   :  { %v674_v45 = vmul.f32 %v672_v44, %v652_v38 }
0x11ed   :  { %676 = vrot.lane.b32.xlu2 %v674_v45, %s1069_s27  ;;  %v699_v46 = vsel %vm698_vm12, %v697_v19, %v674_v45 }
0x11ee   :  { %707 = vrot.lane.b32.xlu1 %v699_v46, %s1069_s27 }
0x11f2   :  { %v683_v47 = vpop.permute.xlu0 %682 }
0x11f3   :  { %685 = vst.msk [vmem:[#allocation13 - $0x7] sm:$0x80] %vm679_vm13, %v683_v47 }
0x1247   :  { %v677_v50 = vpop.permute.xlu2 %676 }
0x1248   :  { %680 = vst.msk [vmem:[#allocation11 - $0x7] sm:$0x80] %vm679_vm13, %v677_v50 }
0x1249   :  { %754 = dma.vmem_to_hbm [thread:$0]  %s750_s30, 16, %s752_s11, [#allocation12]  }
0x124a   :  { %765 = dma.vmem_to_hbm [thread:$0]  %s761_s13, 16, %s763_s16, [#allocation12]  }
0x1260   :  { %v708_v51 = vpop.permute.xlu1 %707 }
0x1261   :  { %799 = vmatmul.msk.f32.vlgmr.msra.gmra.mxu2 %vm124_vm5, %v708_v51 }
0x12e4   :  { %v728_v53 = vpop.f32.mrf.mxu2 }
0x12e5   :  { %v729_v54 = vadd.f32 %v816_v52, %v728_v53 }
0x12e7   :  { %v731_v55 = vmax.f32 %v729_v54, 0.0 }
0x12e9   :  { %732 = vst.msk [vmem:[#allocation10] sm:$0xff] %vm98_vm0, %v731_v55 }
0x12ea   :  { %743 = dma.vmem_to_hbm [thread:$0]  %s739_s1, 128, %s741_s21, [#allocation4]  }
0x12eb   :  { %1055 = dma.done.wait [#allocation4], 128  }
0x12ec   :  { %1056 = vsyncadd [#allocation4], 4294967168 }
0x12ed   :  { %1057 = dma.done.wait [#allocation12], 32  }
0x12ee   :  { %1058 = vsyncadd [#allocation12], 4294967264 }
0x12ef   :  { %778 = vsyncpa [#allocation3], 1 }
0x12f0   :  { %779 = vsyncpa [#allocation6], 1 }
0x12f1   :  { %780 = vsyncpa [#allocation9], 1 }
0x12f2   :  { %781 = vsyncpa [#allocation4], 1 }
0x12f3   :  { %782 = vsyncpa [#allocation12], 1 }

</bundles_post_ra>
